<compile_context>
chip_gen: v7x
topology: tpu7x:2x2x1
jax: 0.10.0
libtpu: 0.0.40
codegen_flags: <defaults>
</compile_context>

<pallas_src>
import functools

import jax
import jax.numpy as jnp
from jax.experimental import pallas as pl
from jax.experimental.pallas import tpu as pltpu


def _round_up(a, b):
    return (a + b - 1) // b * b


def _pick_tile(n, cands=(512, 256, 128)):
    for c in cands:
        if n % c == 0:
            return c
    return n


# ---------------------------------------------------------------------------
# Pass 0: fused Q|K|V projection (node-tiled, parallel).
# ---------------------------------------------------------------------------
def _qkv_proj_kernel(x_ref, w_ref, b_ref, qkv_ref, *, mxu_dtype):
    qkv = jnp.dot(x_ref[...].astype(mxu_dtype), w_ref[...].astype(mxu_dtype),
                  preferred_element_type=jnp.float32) + b_ref[...]
    qkv_ref[...] = qkv.astype(qkv_ref.dtype)


# ---------------------------------------------------------------------------
# Pass 1: edge aggregation (attention scores + scatter-softmax/add).
# ---------------------------------------------------------------------------
def _edge_aggregate_kernel(
    qkv_ref, edge_attr_ref, we_ref, be_ref, head_sum_ref,
    src_ref, dst_ref, dst_row_ref,
    agg_ref,
    m_sc, l_sc, acc_sc,
    *, num_heads, head_dim, mxu_dtype,
):
    eb = pl.program_id(0)
    TE = edge_attr_ref.shape[0]
    Np = qkv_ref.shape[0]
    C = num_heads * head_dim
    scale = head_dim ** -0.5

    @pl.when(eb == 0)
    def _init():
        m_sc[...] = jnp.full_like(m_sc, -jnp.inf)
        l_sc[...] = jnp.zeros_like(l_sc)
        acc_sc[...] = jnp.zeros_like(acc_sc)

    # Per-edge additive bias, already expanded head->channel by the wrapper. [TE, C]
    ew = jnp.dot(edge_attr_ref[...].astype(mxu_dtype), we_ref[...].astype(mxu_dtype),
                 preferred_element_type=jnp.float32) + be_ref[...]

    # One-hot edge<->node operands (entries are 0/1: exact in bf16).
    src_col = src_ref[...]                                        # [TE, 1] int32
    dst_col = dst_ref[...]                                        # [TE, 1] int32
    iota_en = jax.lax.broadcasted_iota(jnp.int32, (TE, Np), 1)
    src_oh_en = (src_col == iota_en).astype(mxu_dtype)            # [TE, Np]
    dst_oh_en = (dst_col == iota_en).astype(mxu_dtype)            # [TE, Np]
    iota_ne = jax.lax.broadcasted_iota(jnp.int32, (Np, TE), 0)
    dst_oh_ne = (iota_ne == dst_row_ref[...]).astype(mxu_dtype)   # [Np, TE]
    # TODO(synk): dst_oh_ne could be dropped in favour of a dim-0-contracting
    # dot_general on dst_oh_en once Mosaic is verified not to insert an XLU
    # transpose for it; kept (plus the row-layout dst input) for lowering safety.

    # Fused gathers as lane-dense MXU matmuls (padded / out-of-range indices drop out).
    q_dst = jnp.dot(dst_oh_en, qkv_ref[:, :C], preferred_element_type=jnp.float32)
    kv_src = jnp.dot(src_oh_en, qkv_ref[:, C:], preferred_element_type=jnp.float32)
    k_src = kv_src[:, :C]
    v_src = kv_src[:, C:]

    # Channel-replicated per-head scores: scores[e, c] is the score of head c//head_dim.
    scores = jnp.dot((q_dst * k_src).astype(mxu_dtype), head_sum_ref[...],
                     preferred_element_type=jnp.float32) * scale + ew        # [TE, C]
    # Mask padded edges so they never touch the running max (padded index == Np).
    valid = src_col < Np
    scores = jnp.where(valid, scores, -1e30)

    # Online (running) per-head max.  The per-node softmax is shift-invariant, so a
    # per-head shift shared by all dst nodes is sufficient for stabilization and
    # avoids any per-node segment-max inside the edge loop.
    m_old = m_sc[...]
    m_new = jnp.maximum(m_old, jnp.max(scores, axis=0, keepdims=True))       # [1, C]
    m_sc[...] = m_new
    corr = jnp.exp(m_old - m_new)                                            # [1, C]

    exp_s = jnp.exp(scores - m_new)                                          # [TE, C]
    weighted = v_src * exp_s                                                 # [TE, C]
    # Fused payload [exp | v*exp]; lane concat is tile-aligned whenever C % 128 == 0.
    payload = jnp.concatenate([exp_s, weighted], axis=-1).astype(mxu_dtype)  # [TE, 2C]

    # Single fused scatter-add into node-resident accumulators (no per-edge divide).
    upd = jnp.dot(dst_oh_ne, payload, preferred_element_type=jnp.float32)    # [Np, 2C]
    l_sc[...] = l_sc[...] * corr + upd[:, :C]
    acc_sc[...] = acc_sc[...] * corr + upd[:, C:]

    @pl.when(eb == pl.num_programs(0) - 1)
    def _finalize():
        l = l_sc[...]
        denom = jnp.where(l > 0.0, l, 1.0)     # isolated dst nodes -> exact zero output
        inv = pl.reciprocal(denom, approx=(mxu_dtype != jnp.float32))        # EUP
        agg_ref[...] = acc_sc[...] * inv


# ---------------------------------------------------------------------------
# Pass 2: output projection + LayerNorm, node-tiled ("parallel" for megacore).
# ---------------------------------------------------------------------------
def _out_proj_layernorm_kernel(agg_ref, wo_ref, bo_ref, gamma_ref, beta_ref, out_ref,
                               *, eps, mxu_dtype):
    out = jnp.dot(agg_ref[...].astype(mxu_dtype), wo_ref[...].astype(mxu_dtype),
                  preferred_element_type=jnp.float32) + bo_ref[...]
    # TODO(synk): dropout after out_proj is identity (eval mode).
    mean = jnp.mean(out, axis=-1, keepdims=True)
    var = jnp.mean((out - mean) ** 2, axis=-1, keepdims=True)
    normed = (out - mean) * jax.lax.rsqrt(var + eps)
    out_ref[...] = normed * gamma_ref[...] + beta_ref[...]


# ---------------------------------------------------------------------------
# Wrapper
# ---------------------------------------------------------------------------
def graph_attention(x, edge_index, edge_attr, params, *, num_heads, head_dim,
                    edge_block=256, mxu_dtype=jnp.bfloat16):
    N, in_dim = x.shape
    E, edge_dim = edge_attr.shape
    C = num_heads * head_dim

    # Lane-dense padding: nodes to a multiple of 128 (lane axis of the one-hot
    # blocks), edges to a multiple of the edge-block size TE.
    Np = _round_up(N, 128)
    TE = min(_round_up(edge_block, 128), _round_up(E, 128))
    E_pad = _round_up(E, TE)
    num_eb = E_pad // TE

    x_p = jnp.zeros((Np, in_dim), jnp.float32).at[:N, :].set(x.astype(jnp.float32))
    ea_p = jnp.zeros((E_pad, edge_dim), jnp.float32).at[:E, :].set(edge_attr.astype(jnp.float32))
    pad_idx = jnp.full((E_pad - E,), Np, dtype=jnp.int32)   # out-of-range => dropped edge
    src_p = jnp.concatenate([edge_index[0].astype(jnp.int32), pad_idx])
    dst_p = jnp.concatenate([edge_index[1].astype(jnp.int32), pad_idx])

    # Layout plumbing done once in the wrapper: fused Q|K|V weights, head->channel
    # expanded edge-projection weights, block-diagonal head-sum operand.
    wqkv = jnp.concatenate([params["wq"], params["wk"], params["wv"]], axis=1)  # [in, 3C]
    bqkv = jnp.concatenate([params["bq"], params["bk"], params["bv"]], axis=1)  # [1, 3C]
    we_c = jnp.repeat(params["we"], head_dim, axis=1)                           # [edge_dim, C]
    be_c = jnp.repeat(params["be"], head_dim, axis=1)                           # [1, C]
    ch = jnp.arange(C, dtype=jnp.int32) // head_dim
    head_sum = (ch[:, None] == ch[None, :]).astype(mxu_dtype)                   # [C, C]

    # --- Pass 0: Q|K|V projection (kept at the MXU operand dtype). ---
    TN0 = _pick_tile(Np)
    qkv = pl.pallas_call(
        functools.partial(_qkv_proj_kernel, mxu_dtype=mxu_dtype),
        out_shape=jax.ShapeDtypeStruct((Np, 3 * C), mxu_dtype),
        grid=(Np // TN0,),
        in_specs=[
            pl.BlockSpec((TN0, in_dim), lambda i: (i, 0)),
            pl.BlockSpec((in_dim, 3 * C), lambda i: (0, 0)),
            pl.BlockSpec((1, 3 * C), lambda i: (0, 0)),
        ],
        out_specs=pl.BlockSpec((TN0, 3 * C), lambda i: (i, 0)),
        compiler_params=pltpu.CompilerParams(dimension_semantics=("parallel",)),
    )(x_p, wqkv, bqkv)

    # --- Pass 1: edge aggregation. ---
    bpe = jnp.dtype(mxu_dtype).itemsize
    est = (
        2 * bpe * Np * 3 * C                        # resident qkv (double-buffer bound)
        + 2 * 4 * TE * edge_dim                     # edge_attr blocks
        + 4 * (edge_dim * C + C) + bpe * C * C      # we / be / head_sum
        + 2 * 4 * 3 * TE                            # src/dst index blocks
        + 4 * (C + 2 * Np * C)                      # m / l / acc scratch
        + 2 * 4 * Np * C                            # agg output
        + bpe * 3 * TE * Np                         # one-hot intermediates
        + 4 * 10 * TE * C                           # per-block f32 intermediates
        + 4 * 2 * Np * C                            # fused scatter update
    )
    try:
        vmem_cap = int(pltpu.get_tpu_info().vmem_capacity_bytes)
    except Exception:  # pragma: no cover - conservative fallback
        vmem_cap = 64 * 1024 * 1024
    vmem_limit = int(min(int(0.75 * vmem_cap), max(2 * est, 32 * 1024 * 1024)))

    kernel1 = functools.partial(_edge_aggregate_kernel, num_heads=num_heads,
                                head_dim=head_dim, mxu_dtype=mxu_dtype)
    agg = pl.pallas_call(
        kernel1,
        out_shape=jax.ShapeDtypeStruct((Np, C), jnp.float32),
        grid=(num_eb,),
        in_specs=[
            pl.BlockSpec((Np, 3 * C), lambda eb: (0, 0)),         # fused q|k|v (resident)
            pl.BlockSpec((TE, edge_dim), lambda eb: (eb, 0)),     # edge_attr block
            pl.BlockSpec((edge_dim, C), lambda eb: (0, 0)),       # we (head->channel)
            pl.BlockSpec((1, C), lambda eb: (0, 0)),              # be (head->channel)
            pl.BlockSpec((C, C), lambda eb: (0, 0)),              # block-diag head-sum
            pl.BlockSpec((TE, 1), lambda eb: (eb, 0)),            # src  (column layout)
            pl.BlockSpec((TE, 1), lambda eb: (eb, 0)),            # dst  (column layout)
            pl.BlockSpec((1, TE), lambda eb: (0, eb)),            # dst  (row layout)
        ],
        out_specs=pl.BlockSpec((Np, C), lambda eb: (0, 0)),
        scratch_shapes=[
            pltpu.VMEM((1, C), jnp.float32),       # running per-head max (channel-replicated)
            pltpu.VMEM((Np, C), jnp.float32),      # softmax denominators (channel-replicated)
            pltpu.VMEM((Np, C), jnp.float32),      # unnormalized weighted-value accumulator
        ],
        compiler_params=pltpu.CompilerParams(
            dimension_semantics=("arbitrary",),    # edge axis is a reduction
            vmem_limit_bytes=vmem_limit),
    )(qkv, ea_p, we_c, be_c, head_sum,
      src_p.reshape(E_pad, 1), dst_p.reshape(E_pad, 1), dst_p.reshape(1, E_pad))

    # --- Pass 2: out_proj + LayerNorm. ---
    TN = _pick_tile(Np)   # up to 512-row node tiles to amortize per-step overhead
    kernel2 = functools.partial(_out_proj_layernorm_kernel, eps=1e-5, mxu_dtype=mxu_dtype)
    out_p = pl.pallas_call(
        kernel2,
        out_shape=jax.ShapeDtypeStruct((Np, C), jnp.float32),
        grid=(Np // TN,),
        in_specs=[
            pl.BlockSpec((TN, C), lambda i: (i, 0)),
            pl.BlockSpec((C, C), lambda i: (0, 0)),
            pl.BlockSpec((1, C), lambda i: (0, 0)),
            pl.BlockSpec((1, C), lambda i: (0, 0)),
            pl.BlockSpec((1, C), lambda i: (0, 0)),
        ],
        out_specs=pl.BlockSpec((TN, C), lambda i: (i, 0)),
        compiler_params=pltpu.CompilerParams(
            dimension_semantics=("parallel",)),    # node blocks shard across TCs (v7x)
    )(agg, params["wo"], params["bo"], params["gamma"], params["beta"])

    return out_p[:N]


# ---------------------------------------------------------------------------
# Pure-JAX reference (matches the PyTorch forward, eval mode).
# ---------------------------------------------------------------------------
def graph_attention_reference(x, edge_index, edge_attr, params, *, num_heads, head_dim):
    N = x.shape[0]
    C = num_heads * head_dim
    q = (x @ params["wq"] + params["bq"]).reshape(N, num_heads, head_dim)
    k = (x @ params["wk"] + params["bk"]).reshape(N, num_heads, head_dim)
    v = (x @ params["wv"] + params["bv"]).reshape(N, num_heads, head_dim)
    ew = edge_attr @ params["we"] + params["be"]
    src, dst = edge_index[0], edge_index[1]
    scores = jnp.sum(q[dst] * k[src], axis=-1) * (head_dim ** -0.5) + ew   # [E, H]
    max_per_node = jax.ops.segment_max(scores, dst, num_segments=N)
    max_per_node = jnp.where(jnp.isneginf(max_per_node), 0.0, max_per_node)
    exp_s = jnp.exp(scores - max_per_node[dst])
    denom = jax.ops.segment_sum(exp_s, dst, num_segments=N)
    alpha = exp_s / denom[dst]
    weighted = v[src] * alpha[:, :, None]
    out = jax.ops.segment_sum(weighted, dst, num_segments=N).reshape(N, C)
    out = out @ params["wo"] + params["bo"]
    mean = out.mean(-1, keepdims=True)
    var = ((out - mean) ** 2).mean(-1, keepdims=True)
    normed = (out - mean) / jnp.sqrt(var + 1e-5)
    return normed * params["gamma"] + params["beta"]


if __name__ == "__main__":
    # Small synthetic problem consistent with the module's forward; lane-friendly
    # channel count (out_dim = 128 = 8 heads x 16) and >1 edge block (E > 256).
    N, E = 40, 300
    in_dim, out_dim, edge_dim = 64, 128, 16
    num_heads = 8
    head_dim = out_dim // num_heads

    key = jax.random.PRNGKey(0)
    keys = jax.random.split(key, 16)

    x = jax.random.normal(keys[0], (N, in_dim), dtype=jnp.float32)
    edge_attr = jax.random.normal(keys[1], (E, edge_dim), dtype=jnp.float32)
    src = jax.random.randint(keys[2], (E,), 0, N, dtype=jnp.int32)
    dst = jax.random.randint(keys[3], (E,), 0, N, dtype=jnp.int32)
    edge_index = jnp.stack([src, dst], axis=0)          # [2, E]

    def lin(kw, kb, fan_in, fan_out):
        bound = 1.0 / (fan_in ** 0.5)
        w = jax.random.uniform(kw, (fan_in, fan_out), jnp.float32, -bound, bound)
        b = jax.random.uniform(kb, (1, fan_out), jnp.float32, -bound, bound)
        return w, b

    wq, bq = lin(keys[4], keys[5], in_dim, out_dim)
    wk, bk = lin(keys[6], keys[7], in_dim, out_dim)
    wv, bv = lin(keys[8], keys[9], in_dim, out_dim)
    we, be = lin(keys[10], keys[11], edge_dim, num_heads)
    wo, bo = lin(keys[12], keys[13], out_dim, out_dim)
    gamma = jnp.ones((1, out_dim), jnp.float32)
    beta = jnp.zeros((1, out_dim), jnp.float32)

    params = dict(wq=wq, bq=bq, wk=wk, bk=bk, wv=wv, bv=bv,
                  we=we, be=be, wo=wo, bo=bo, gamma=gamma, beta=beta)

    ref = jax.block_until_ready(graph_attention_reference(
        x, edge_index, edge_attr, params, num_heads=num_heads, head_dim=head_dim))

    # f32 MXU path (near-exact vs reference).
    out_f32 = jax.block_until_ready(graph_attention(
        x, edge_index, edge_attr, params, num_heads=num_heads, head_dim=head_dim,
        mxu_dtype=jnp.float32))
    assert out_f32.shape == (N, out_dim)
    assert jnp.allclose(out_f32, ref, rtol=2e-4, atol=2e-4), (
        f"f32 max abs diff {jnp.max(jnp.abs(out_f32 - ref))}")

    # bf16 MXU path (default: bf16-native MXU rate, one-hots exact; loose tolerance).
    out_bf16 = jax.block_until_ready(graph_attention(
        x, edge_index, edge_attr, params, num_heads=num_heads, head_dim=head_dim))
    assert out_bf16.shape == (N, out_dim)
    assert jnp.allclose(out_bf16, ref, rtol=1e-1, atol=1e-1), (
        f"bf16 max abs diff {jnp.max(jnp.abs(out_bf16 - ref))}")

    print("KERNEL_OK")
</pallas_src>

<mosaic_0001>
module attributes {stable_mosaic.version = 11 : i64} {
  func.func @_qkv_proj_kernel(%arg0: i32, %arg1: memref<128x64xf32, #tpu.memory_space<vmem>>, %arg2: memref<64x384xf32, #tpu.memory_space<vmem>>, %arg3: memref<1x384xf32, #tpu.memory_space<vmem>>, %arg4: memref<128x384xf32, #tpu.memory_space<vmem>>) attributes {dimension_semantics = [#tpu.dimension_semantics<parallel>], iteration_bounds = array<i64: 1>, scalar_prefetch = 0 : i64, scratch_operands = 0 : i64, tpu.core_type = #tpu.core_type<tc>, window_params = [{transform_indices = @transform_0, window_bounds = array<i64: 128, 64>}, {pipeline_mode = #tpu.pipeline_mode<synchronous>, transform_indices = @transform_1, window_bounds = array<i64: 64, 384>}, {pipeline_mode = #tpu.pipeline_mode<synchronous>, transform_indices = @transform_2, window_bounds = array<i64: 1, 384>}, {transform_indices = @transform_3, window_bounds = array<i64: 128, 384>}]} {
    %c0 = arith.constant 0 : index
    %c0_0 = arith.constant 0 : index
    %0 = vector.load %arg1[%c0, %c0_0] : memref<128x64xf32, #tpu.memory_space<vmem>>, vector<128x64xf32>
    %c0_1 = arith.constant 0 : index
    %c0_2 = arith.constant 0 : index
    %1 = vector.load %arg2[%c0_1, %c0_2] : memref<64x384xf32, #tpu.memory_space<vmem>>, vector<64x384xf32>
    %cst = arith.constant dense<0.000000e+00> : vector<128x384xf32>
    %2 = tpu.matmul %0, %1, %cst {dimension_numbers = #tpu.dot_dimension_numbers<[1], [0], [0], [1], [0, 0, 1, 1], [], []>} : vector<128x64xf32>, vector<64x384xf32>, vector<128x384xf32> -> vector<128x384xf32>
    %c0_3 = arith.constant 0 : index
    %c0_4 = arith.constant 0 : index
    %3 = vector.load %arg3[%c0_3, %c0_4] : memref<1x384xf32, #tpu.memory_space<vmem>>, vector<1x384xf32>
    %4 = vector.broadcast %3 : vector<1x384xf32> to vector<128x384xf32>
    %5 = arith.addf %2, %4 : vector<128x384xf32>
    %c0_5 = arith.constant 0 : index
    %c0_6 = arith.constant 0 : index
    %6 = vector.load %arg4[%c0_5, %c0_6] : memref<128x384xf32, #tpu.memory_space<vmem>>, vector<128x384xf32>
    tpu.vector_store %arg4[%c0_5, %c0_6], %5 {strides = array<i32>} : memref<128x384xf32, #tpu.memory_space<vmem>>, vector<128x384xf32>,
    return
  }
  func.func @transform_0(%arg0: i32) -> (i32, i32) {
    %c0_i32 = arith.constant 0 : i32
    %c0_i32_0 = arith.constant 0 : i32
    return %arg0, %c0_i32 : i32, i32
  }
  func.func @transform_1(%arg0: i32) -> (i32, i32) {
    %c0_i32 = arith.constant 0 : i32
    %c0_i32_0 = arith.constant 0 : i32
    %c0_i32_1 = arith.constant 0 : i32
    return %c0_i32, %c0_i32_0 : i32, i32
  }
  func.func @transform_2(%arg0: i32) -> (i32, i32) {
    %c0_i32 = arith.constant 0 : i32
    %c0_i32_0 = arith.constant 0 : i32
    %c0_i32_1 = arith.constant 0 : i32
    return %c0_i32, %c0_i32_0 : i32, i32
  }
  func.func @transform_3(%arg0: i32) -> (i32, i32) {
    %c0_i32 = arith.constant 0 : i32
    %c0_i32_0 = arith.constant 0 : i32
    return %arg0, %c0_i32 : i32, i32
  }
}

</mosaic_0001>

<bundles_post_ra>
// kernel: tpu_custom_call.1
= control target key start
LH: loop header
LB: loop body
LE: loop exit
PB: predicated region body
PF: predicated region fallthrough
CT: control target
= control target key end

     0   :  { %v655_v7 = vmov 0.0   ;;  %s920_s0 = inlined_call_operand.vmem [shape: f32[128,64], index: 0, kind: input, shape index: {}]   ;;  %s921_s1 = inlined_call_operand.vmem [shape: f32[64,384], index: 1, kind: input, shape index: {}]   ;;  %s922_s2 = inlined_call_operand.vmem [shape: f32[1,384], index: 2, kind: input, shape index: {}]   ;;  %s923_s3 = inlined_call_operand.hbm [shape: f32[128,384], index: 3, kind: output, shape index: {}]  }
   0x1   :  { %v32_v0 = vld [vmem:[%s921_s1 + $0x8] sm:$0xff]  ;;  %v35_v1 = vld [vmem:[%s921_s1 + $0x20] sm:$0xff]  ;;  %v34_v4 = vld [vmem:[%s921_s1 + $0x18] sm:$0xff]  ;;  %185 = vmatprep.mubr.f32.mxu0 %v655_v7  ;;  %257 = vmatprep.mubr.f32.mxu1 %v655_v7 }
   0x2   :  { %v31_v2 = vld [vmem:[%s921_s1] sm:$0xff]  ;;  %v587_v3 = vpack.c.bf16 %v35_v1, %v32_v0  ;;  %v38_v5 = vld [vmem:[%s921_s1 + $0x38] sm:$0xff]  ;;  %v41_v6 = vld [vmem:[%s921_s1 + $0x50] sm:$0xff] }
   0x3   :  { %v589_v8 = vpack.c.bf16 %v34_v4, %v31_v2  ;;  %v591_v9 = vpack.c.bf16 %v41_v6, %v38_v5  ;;  %v37_v10 = vld [vmem:[%s921_s1 + $0x30] sm:$0xff]  ;;  %v40_v11 = vld [vmem:[%s921_s1 + $0x48] sm:$0xff]  ;;  %v47_v13 = vld [vmem:[%s921_s1 + $0x80] sm:$0xff] }
   0x4   :  { %v44_v12 = vld [vmem:[%s921_s1 + $0x68] sm:$0xff]  ;;  %588 = vmatprep.subr.bf16.mxu0 %v587_v3  ;;  %619 = vmatprep.subr.bf16.mxu1 %v587_v3  ;;  %v593_v14 = vpack.c.bf16 %v40_v11, %v37_v10  ;;  %v43_v16 = vld [vmem:[%s921_s1 + $0x60] sm:$0xff]  ;;  %v46_v17 = vld [vmem:[%s921_s1 + $0x78] sm:$0xff] }
   0x5   :  { %590 = vmatpush1.bf16.msra.mxu0 %v589_v8  ;;  %623 = vmatpush1.bf16.msra.mxu1 %v589_v8  ;;  %v595_v15 = vpack.c.bf16 %v47_v13, %v44_v12  ;;  %v50_v18 = vld [vmem:[%s921_s1 + $0x98] sm:$0xff]  ;;  %v53_v19 = vld [vmem:[%s921_s1 + $0xb0] sm:$0xff]  ;;  %v597_v20 = vpack.c.bf16 %v46_v17, %v43_v16  ;;  %v52_v23 = vld [vmem:[%s921_s1 + $0xa8] sm:$0xff] }
   0x6   :  { %592 = vmatprep.subr.bf16.mxu0 %v591_v9  ;;  %620 = vmatprep.subr.bf16.mxu1 %v591_v9  ;;  %v599_v21 = vpack.c.bf16 %v53_v19, %v50_v18  ;;  %v49_v22 = vld [vmem:[%s921_s1 + $0x90] sm:$0xff]  ;;  %v36_v25 = vld [vmem:[%s921_s1 + $0x28] sm:$0xff] }
   0x7   :  { %v33_v24 = vld [vmem:[%s921_s1 + $0x10] sm:$0xff]  ;;  %v601_v26 = vpack.c.bf16 %v52_v23, %v49_v22 }
   0x8   :  { %v603_v27 = vpack.c.bf16 %v36_v25, %v33_v24 }
   0x9   :  { %594 = vmatpush1.bf16.msra.mxu0 %v593_v14  ;;  %624 = vmatpush1.bf16.msra.mxu1 %v593_v14 }
   0xa   :  { %596 = vmatprep.subr.bf16.mxu0 %v595_v15  ;;  %621 = vmatprep.subr.bf16.mxu1 %v595_v15 }
   0xd   :  { %598 = vmatpush1.bf16.msra.mxu0 %v597_v20  ;;  %625 = vmatpush1.bf16.msra.mxu1 %v597_v20 }
   0xe   :  { %600 = vmatprep.subr.bf16.mxu0 %v599_v21  ;;  %622 = vmatprep.subr.bf16.mxu1 %v599_v21 }
   0xf   :  { %8 = vsyncpa [#allocation3], 0  ;;  %v39_v28 = vld [vmem:[%s921_s1 + $0x40] sm:$0xff]  ;;  %v42_v29 = vld [vmem:[%s921_s1 + $0x58] sm:$0xff]  ;;  %vm72_vm0 = vcmask 523264   ;;  %v57_v53 = vlaneseq }
  0x10   :  { %v15_v30 = vld [vmem:[%s920_s0] sm:$0xff]  ;;  %v607_v32 = vpack.c.bf16 %v42_v29, %v39_v28  ;;  %v45_v33 = vld [vmem:[%s921_s1 + $0x70] sm:$0xff]  ;;  %v48_v34 = vld [vmem:[%s921_s1 + $0x88] sm:$0xff] }
  0x11   :  { %602 = vmatpush1.bf16.msra.mxu0 %v601_v26  ;;  %626 = vmatpush1.bf16.msra.mxu1 %v601_v26  ;;  %v747_v31 = vld [vmem:[%s920_s0 + $0x60] sm:$0xff]  ;;  %v16_v35 = vld [vmem:[%s920_s0 + $0x8] sm:$0xff]  ;;  %v611_v37 = vpack.c.bf16 %v48_v34, %v45_v33  ;;  %v54_v39 = vld [vmem:[%s921_s1 + $0xb8] sm:$0xff]  ;;  %v58_v54 = vshrl.u32 %v57_v53, 7 }
  0x12   :  { %604 = vmatprep.subr.bf16.mxu1 %v603_v27  ;;  %v28_v36 = vld [vmem:[%s920_s0 + $0x68] sm:$0xff]  ;;  %v51_v38 = vld [vmem:[%s921_s1 + $0xa0] sm:$0xff]  ;;  %v17_v40 = vld [vmem:[%s920_s0 + $0x10] sm:$0xff] }
  0x13   :  { %v29_v41 = vld [vmem:[%s920_s0 + $0x70] sm:$0xff]  ;;  %v615_v42 = vpack.c.bf16 %v54_v39, %v51_v38  ;;  %v18_v43 = vld [vmem:[%s920_s0 + $0x18] sm:$0xff]  ;;  %v19_v45 = vld [vmem:[%s920_s0 + $0x20] sm:$0xff]  ;;  %v59_v55 = vsub.s32 0, %v58_v54  ;;  %v63_v57 = vsub.s32 1, %v58_v54  ;;  %v67_v18 = vsub.s32 2, %v58_v54 }
  0x14   :  { %491 = vmatmul.mubr.msk.f32.vlgmr.msra.gmra.mrb[0].mxu0 %vm72_vm0, %v15_v30  ;;  %503 = vmatmul.mubr.msk.f32.vlgmr.msra.gmra.mrb[0].mxu1 %vm72_vm0, %v747_v31  ;;  %v30_v44 = vld [vmem:[%s920_s0 + $0x78] sm:$0xff]  ;;  %v20_v46 = vld [vmem:[%s920_s0 + $0x28] sm:$0xff]  ;;  %v21_v47 = vld [vmem:[%s920_s0 + $0x30] sm:$0xff] }
  0x15   :  { %606 = vmatpush3.bf16.msra.mxu1 %v603_v27  ;;  %191 = vmatprep.mubr.f32.mxu0 %v655_v7  ;;  %v22_v48 = vld [vmem:[%s920_s0 + $0x38] sm:$0xff]  ;;  %v23_v49 = vld [vmem:[%s920_s0 + $0x40] sm:$0xff]  ;;  %v24_v50 = vld [vmem:[%s920_s0 + $0x48] sm:$0xff] }
  0x16   :  { %263 = vmatprep.mubr.f32.mxu1 %v655_v7  ;;  %608 = vmatprep.subr.bf16.mxu1 %v607_v32  ;;  %v25_v51 = vld [vmem:[%s920_s0 + $0x50] sm:$0xff]  ;;  %v26_v52 = vld [vmem:[%s920_s0 + $0x58] sm:$0xff]  ;;  %v55_v56 = vld [vmem:[%s922_s2] sm:$0x7]  ;;  %s656_s2 = smov [#allocation2]  }
  0x17   :  { %v854_v58 = vrot.slane %v55_v56, %v59_v55  ;;  %v856_v59 = vrot.slane %v55_v56, %v63_v57  ;;  %v872_v27 = vrot.slane %v55_v56, %v67_v18  ;;  %s480_s11 = sshll.u32 %s656_s2, 4  ;;  %s481_s11 = int_to_ptr.vmem [resolvable:$true] %s480_s11 }
  0x18   :  { %492 = vmatmul.mubr.msk.f32.gmra.mrb[2].mxu0 %vm72_vm0, %v16_v35  ;;  %504 = vmatmul.mubr.msk.f32.gmra.mrb[2].mxu1 %vm72_vm0, %v28_v36  ;;  %s631_s12 = scalar_lea.vmem %s481_s11, 6144  ;;  %p636_p1 = scmp.lt.s32.totalorder %s481_s11, %s481_s11 }
  0x19   :  { %610 = vmatpush3.bf16.msra.mxu1 %v607_v32  ;;  %197 = vmatprep.mubr.f32.mxu0 %v655_v7  ;;  %p632_p0 = scmp.ne.s32.totalorder %s481_s11, %s631_s12  ;;  %p637_p2 = scmp.lt.s32.totalorder %s631_s12, %s631_s12 }
  0x1a   :  { %269 = vmatprep.mubr.f32.mxu1 %v655_v7  ;;  %612 = vmatprep.subr.bf16.mxu1 %v611_v37 }
  0x1b   :  { %p638_p3 = por %p637_p2, %p636_p1 }
  0x1c   :  { %493 = vmatmul.mubr.msk.f32.gmra.mrb[4].mxu0 %vm72_vm0, %v17_v40  ;;  %505 = vmatmul.mubr.msk.f32.gmra.mrb[4].mxu1 %vm72_vm0, %v29_v41 }
  0x1d   :  { %614 = vmatpush3.bf16.msra.mxu1 %v611_v37  ;;  %203 = vmatprep.mubr.f32.mxu0 %v655_v7  ;;  %p639_p4 = pnand %p638_p3, %p632_p0 }
  0x1e   :  { %275 = vmatprep.mubr.f32.mxu1 %v655_v7  ;;  %616 = vmatprep.subr.bf16.mxu1 %v615_v42 }
  0x20   :  { %494 = vmatmul.mubr.msk.f32.gmra.mrb[6].mxu0 %vm72_vm0, %v18_v43  ;;  %506 = vmatmul.mubr.msk.f32.gmra.mrb[6].mxu1 %vm72_vm0, %v30_v44 }
  0x21   :  { %618 = vmatpush3.bf16.msra.mxu1 %v615_v42  ;;  %209 = vmatprep.mubr.f32.mxu0 %v655_v7 }
  0x22   :  { %563 = vmatprep.mubr.msk.f32.mxu1 %vm72_vm0, %v15_v30 }
  0x24   :  { %495 = vmatmul.mubr.msk.f32.gmra.mrb[8].mxu0 %vm72_vm0, %v19_v45  ;;  %564 = vmatmul.mubr.msk.f32.vlgmr.msra.gmra.mrb[8].mxu1 %vm72_vm0, %v16_v35 }
  0x25   :  { %215 = vmatprep.mubr.f32.mxu0 %v655_v7  ;;  %566 = vmatprep.mubr.msk.f32.mxu1 %vm72_vm0, %v17_v40 }
  0x28   :  { %496 = vmatmul.mubr.msk.f32.gmra.mrb[10].mxu0 %vm72_vm0, %v20_v46  ;;  %567 = vmatmul.mubr.msk.f32.gmra.mrb[10].mxu1 %vm72_vm0, %v18_v43 }
  0x29   :  { %221 = vmatprep.mubr.f32.mxu0 %v655_v7  ;;  %569 = vmatprep.mubr.msk.f32.mxu1 %vm72_vm0, %v19_v45 }
  0x2c   :  { %497 = vmatmul.mubr.msk.f32.gmra.mrb[12].mxu0 %vm72_vm0, %v21_v47  ;;  %570 = vmatmul.mubr.msk.f32.gmra.mrb[12].mxu1 %vm72_vm0, %v20_v46 }
  0x2d   :  { %227 = vmatprep.mubr.f32.mxu0 %v655_v7  ;;  %572 = vmatprep.mubr.msk.f32.mxu1 %vm72_vm0, %v21_v47 }
  0x30   :  { %498 = vmatmul.mubr.msk.f32.gmra.mrb[14].mxu0 %vm72_vm0, %v22_v48  ;;  %573 = vmatmul.mubr.msk.f32.gmra.mrb[14].mxu1 %vm72_vm0, %v22_v48 }
  0x31   :  { %233 = vmatprep.mubr.f32.mxu0 %v655_v7  ;;  %575 = vmatprep.mubr.msk.f32.mxu1 %vm72_vm0, %v23_v49 }
  0x34   :  { %499 = vmatmul.mubr.msk.f32.gmra.mrb[16].mxu0 %vm72_vm0, %v23_v49  ;;  %576 = vmatmul.mubr.msk.f32.gmra.mrb[16].mxu1 %vm72_vm0, %v24_v50 }
  0x35   :  { %239 = vmatprep.mubr.f32.mxu0 %v655_v7  ;;  %578 = vmatprep.mubr.msk.f32.mxu1 %vm72_vm0, %v25_v51 }
  0x38   :  { %500 = vmatmul.mubr.msk.f32.gmra.mrb[18].mxu0 %vm72_vm0, %v24_v50  ;;  %579 = vmatmul.mubr.msk.f32.gmra.mrb[18].mxu1 %vm72_vm0, %v26_v52 }
  0x39   :  { %245 = vmatprep.mubr.f32.mxu0 %v655_v7  ;;  %581 = vmatprep.mubr.msk.f32.mxu1 %vm72_vm0, %v747_v31 }
  0x3c   :  { %501 = vmatmul.mubr.msk.f32.gmra.mrb[20].mxu0 %vm72_vm0, %v25_v51  ;;  %582 = vmatmul.mubr.msk.f32.gmra.mrb[20].mxu1 %vm72_vm0, %v28_v36 }
  0x3d   :  { %251 = vmatprep.mubr.f32.mxu0 %v655_v7  ;;  %584 = vmatprep.mubr.msk.f32.mxu1 %vm72_vm0, %v29_v41 }
  0x40   :  { %502 = vmatmul.mubr.msk.f32.gmra.mrb[22].mxu0 %vm72_vm0, %v26_v52  ;;  %585 = vmatmul.mubr.msk.f32.gmra.mrb[22].mxu1 %vm72_vm0, %v30_v44 }
  0xe7   :  { %v187_v60 = vpop.f32.mrb[0].mxu0  ;;  %v259_v61 = vpop.f32.mrb[0].mxu1 }
  0xe8   :  { %v188_v62 = vadd.f32 %v187_v60, %v854_v58  ;;  %v260_v63 = vadd.f32 %v259_v61, %v854_v58  ;;  %v189_v0 = vpop.f32.mrb[1].mxu0  ;;  %v261_v1 = vpop.f32.mrb[1].mxu1 }
  0xe9   :  { %v190_v2 = vadd.f32 %v189_v0, %v856_v59  ;;  %v262_v3 = vadd.f32 %v261_v1, %v856_v59 }
  0xea   :  { %427 = vst [vmem:[#allocation2] sm:$0xff] %v188_v62  ;;  %463 = vst [vmem:[#allocation2 + $0x120] sm:$0xff] %v260_v63 }
  0xeb   :  { %428 = vst [vmem:[#allocation2 + $0x8] sm:$0xff] %v190_v2  ;;  %464 = vst [vmem:[#allocation2 + $0x128] sm:$0xff] %v262_v3  ;;  %v193_v4 = vpop.f32.mrb[2].mxu0  ;;  %v265_v5 = vpop.f32.mrb[2].mxu1 }
  0xec   :  { %v194_v6 = vadd.f32 %v193_v4, %v854_v58  ;;  %v266_v7 = vadd.f32 %v265_v5, %v854_v58  ;;  %v195_v8 = vpop.f32.mrb[3].mxu0  ;;  %v267_v9 = vpop.f32.mrb[3].mxu1 }
  0xed   :  { %v196_v10 = vadd.f32 %v195_v8, %v856_v59  ;;  %v268_v11 = vadd.f32 %v267_v9, %v856_v59 }
  0xee   :  { %430 = vst [vmem:[#allocation2 + $0x18] sm:$0xff] %v194_v6  ;;  %466 = vst [vmem:[#allocation2 + $0x138] sm:$0xff] %v266_v7 }
  0xef   :  { %431 = vst [vmem:[#allocation2 + $0x20] sm:$0xff] %v196_v10  ;;  %467 = vst [vmem:[#allocation2 + $0x140] sm:$0xff] %v268_v11  ;;  %v199_v12 = vpop.f32.mrb[4].mxu0  ;;  %v271_v13 = vpop.f32.mrb[4].mxu1 }
  0xf0   :  { %v200_v14 = vadd.f32 %v199_v12, %v854_v58  ;;  %v272_v15 = vadd.f32 %v271_v13, %v854_v58  ;;  %v201_v16 = vpop.f32.mrb[5].mxu0  ;;  %v273_v17 = vpop.f32.mrb[5].mxu1 }
  0xf1   :  { %v202_v19 = vadd.f32 %v201_v16, %v856_v59  ;;  %v274_v20 = vadd.f32 %v273_v17, %v856_v59 }
  0xf2   :  { %433 = vst [vmem:[#allocation2 + $0x30] sm:$0xff] %v200_v14  ;;  %469 = vst [vmem:[#allocation2 + $0x150] sm:$0xff] %v272_v15 }
  0xf3   :  { %434 = vst [vmem:[#allocation2 + $0x38] sm:$0xff] %v202_v19  ;;  %470 = vst [vmem:[#allocation2 + $0x158] sm:$0xff] %v274_v20  ;;  %v205_v21 = vpop.f32.mrb[6].mxu0  ;;  %v277_v22 = vpop.f32.mrb[6].mxu1 }
  0xf4   :  { %v206_v23 = vadd.f32 %v205_v21, %v854_v58  ;;  %v278_v24 = vadd.f32 %v277_v22, %v854_v58  ;;  %v207_v25 = vpop.f32.mrb[7].mxu0  ;;  %v279_v26 = vpop.f32.mrb[7].mxu1 }
  0xf5   :  { %v208_v28 = vadd.f32 %v207_v25, %v856_v59  ;;  %v280_v29 = vadd.f32 %v279_v26, %v856_v59 }
  0xf6   :  { %436 = vst [vmem:[#allocation2 + $0x48] sm:$0xff] %v206_v23  ;;  %472 = vst [vmem:[#allocation2 + $0x168] sm:$0xff] %v278_v24 }
  0xf7   :  { %437 = vst [vmem:[#allocation2 + $0x50] sm:$0xff] %v208_v28  ;;  %473 = vst [vmem:[#allocation2 + $0x170] sm:$0xff] %v280_v29  ;;  %v211_v30 = vpop.f32.mrb[8].mxu0  ;;  %v565_v31 = vpop.f32.mrb[8].mxu1 }
  0xf8   :  { %v212_v32 = vadd.f32 %v211_v30, %v854_v58  ;;  %v354_v33 = vadd.f32 %v565_v31, %v872_v27  ;;  %v213_v34 = vpop.f32.mrb[9].mxu0  ;;  %v348_v35 = vpop.f32.mrb[9].mxu1 }
  0xf9   :  { %v214_v36 = vadd.f32 %v213_v34, %v856_v59  ;;  %v349_v37 = vadd.f32 %v348_v35, %v872_v27 }
  0xfa   :  { %439 = vst [vmem:[#allocation2 + $0x60] sm:$0xff] %v212_v32  ;;  %432 = vst [vmem:[#allocation2 + $0x28] sm:$0xff] %v354_v33 }
  0xfb   :  { %440 = vst [vmem:[#allocation2 + $0x68] sm:$0xff] %v214_v36  ;;  %429 = vst [vmem:[#allocation2 + $0x10] sm:$0xff] %v349_v37  ;;  %v217_v38 = vpop.f32.mrb[10].mxu0  ;;  %v568_v39 = vpop.f32.mrb[10].mxu1 }
  0xfc   :  { %v218_v40 = vadd.f32 %v217_v38, %v854_v58  ;;  %v364_v41 = vadd.f32 %v568_v39, %v872_v27  ;;  %v219_v42 = vpop.f32.mrb[11].mxu0  ;;  %v358_v43 = vpop.f32.mrb[11].mxu1 }
  0xfd   :  { %v220_v44 = vadd.f32 %v219_v42, %v856_v59  ;;  %v359_v45 = vadd.f32 %v358_v43, %v872_v27 }
  0xfe   :  { %442 = vst [vmem:[#allocation2 + $0x78] sm:$0xff] %v218_v40  ;;  %438 = vst [vmem:[#allocation2 + $0x58] sm:$0xff] %v364_v41 }
  0xff   :  { %443 = vst [vmem:[#allocation2 + $0x80] sm:$0xff] %v220_v44  ;;  %435 = vst [vmem:[#allocation2 + $0x40] sm:$0xff] %v359_v45  ;;  %v223_v46 = vpop.f32.mrb[12].mxu0  ;;  %v571_v47 = vpop.f32.mrb[12].mxu1 }
 0x100   :  { %v224_v48 = vadd.f32 %v223_v46, %v854_v58  ;;  %v374_v49 = vadd.f32 %v571_v47, %v872_v27  ;;  %v225_v50 = vpop.f32.mrb[13].mxu0  ;;  %v368_v51 = vpop.f32.mrb[13].mxu1 }
 0x101   :  { %v226_v52 = vadd.f32 %v225_v50, %v856_v59  ;;  %v369_v53 = vadd.f32 %v368_v51, %v872_v27 }
 0x102   :  { %445 = vst [vmem:[#allocation2 + $0x90] sm:$0xff] %v224_v48  ;;  %444 = vst [vmem:[#allocation2 + $0x88] sm:$0xff] %v374_v49 }
 0x103   :  { %446 = vst [vmem:[#allocation2 + $0x98] sm:$0xff] %v226_v52  ;;  %441 = vst [vmem:[#allocation2 + $0x70] sm:$0xff] %v369_v53  ;;  %v229_v54 = vpop.f32.mrb[14].mxu0  ;;  %v574_v55 = vpop.f32.mrb[14].mxu1 }
 0x104   :  { %v230_v56 = vadd.f32 %v229_v54, %v854_v58  ;;  %v384_v57 = vadd.f32 %v574_v55, %v872_v27  ;;  %v231_v60 = vpop.f32.mrb[15].mxu0  ;;  %v378_v61 = vpop.f32.mrb[15].mxu1 }
 0x105   :  { %v232_v62 = vadd.f32 %v231_v60, %v856_v59  ;;  %v379_v63 = vadd.f32 %v378_v61, %v872_v27 }
 0x106   :  { %448 = vst [vmem:[#allocation2 + $0xa8] sm:$0xff] %v230_v56  ;;  %450 = vst [vmem:[#allocation2 + $0xb8] sm:$0xff] %v384_v57 }
 0x107   :  { %449 = vst [vmem:[#allocation2 + $0xb0] sm:$0xff] %v232_v62  ;;  %447 = vst [vmem:[#allocation2 + $0xa0] sm:$0xff] %v379_v63  ;;  %v235_v0 = vpop.f32.mrb[16].mxu0  ;;  %v577_v1 = vpop.f32.mrb[16].mxu1 }
 0x108   :  { %v236_v2 = vadd.f32 %v235_v0, %v854_v58  ;;  %v394_v3 = vadd.f32 %v577_v1, %v872_v27  ;;  %v237_v4 = vpop.f32.mrb[17].mxu0  ;;  %v388_v5 = vpop.f32.mrb[17].mxu1 }
 0x109   :  { %v238_v6 = vadd.f32 %v237_v4, %v856_v59  ;;  %v389_v7 = vadd.f32 %v388_v5, %v872_v27 }
 0x10a   :  { %451 = vst [vmem:[#allocation2 + $0xc0] sm:$0xff] %v236_v2  ;;  %456 = vst [vmem:[#allocation2 + $0xe8] sm:$0xff] %v394_v3 }
 0x10b   :  { %452 = vst [vmem:[#allocation2 + $0xc8] sm:$0xff] %v238_v6  ;;  %453 = vst [vmem:[#allocation2 + $0xd0] sm:$0xff] %v389_v7  ;;  %v241_v8 = vpop.f32.mrb[18].mxu0  ;;  %v580_v9 = vpop.f32.mrb[18].mxu1 }
 0x10c   :  { %v242_v10 = vadd.f32 %v241_v8, %v854_v58  ;;  %v404_v11 = vadd.f32 %v580_v9, %v872_v27  ;;  %v243_v12 = vpop.f32.mrb[19].mxu0  ;;  %v398_v13 = vpop.f32.mrb[19].mxu1 }
 0x10d   :  { %v244_v14 = vadd.f32 %v243_v12, %v856_v59  ;;  %v399_v15 = vadd.f32 %v398_v13, %v872_v27 }
 0x10e   :  { %454 = vst [vmem:[#allocation2 + $0xd8] sm:$0xff] %v242_v10  ;;  %462 = vst [vmem:[#allocation2 + $0x118] sm:$0xff] %v404_v11 }
 0x10f   :  { %455 = vst [vmem:[#allocation2 + $0xe0] sm:$0xff] %v244_v14  ;;  %459 = vst [vmem:[#allocation2 + $0x100] sm:$0xff] %v399_v15  ;;  %v247_v16 = vpop.f32.mrb[20].mxu0  ;;  %v583_v17 = vpop.f32.mrb[20].mxu1 }
 0x110   :  { %v248_v18 = vadd.f32 %v247_v16, %v854_v58  ;;  %v414_v19 = vadd.f32 %v583_v17, %v872_v27  ;;  %v249_v20 = vpop.f32.mrb[21].mxu0  ;;  %v408_v21 = vpop.f32.mrb[21].mxu1 }
 0x111   :  { %v250_v22 = vadd.f32 %v249_v20, %v856_v59  ;;  %v409_v23 = vadd.f32 %v408_v21, %v872_v27 }
 0x112   :  { %457 = vst [vmem:[#allocation2 + $0xf0] sm:$0xff] %v248_v18  ;;  %468 = vst [vmem:[#allocation2 + $0x148] sm:$0xff] %v414_v19 }
 0x113   :  { %458 = vst [vmem:[#allocation2 + $0xf8] sm:$0xff] %v250_v22  ;;  %465 = vst [vmem:[#allocation2 + $0x130] sm:$0xff] %v409_v23  ;;  %v253_v24 = vpop.f32.mrb[22].mxu0  ;;  %v586_v25 = vpop.f32.mrb[22].mxu1 }
 0x114   :  { %v254_v26 = vadd.f32 %v253_v24, %v854_v58  ;;  %v424_v28 = vadd.f32 %v586_v25, %v872_v27  ;;  %v255_v29 = vpop.f32.mrb[23].mxu0  ;;  %v418_v30 = vpop.f32.mrb[23].mxu1 }
 0x115   :  { %v256_v31 = vadd.f32 %v255_v29, %v856_v59  ;;  %v419_v32 = vadd.f32 %v418_v30, %v872_v27 }
 0x116   :  { %460 = vst [vmem:[#allocation2 + $0x108] sm:$0xff] %v254_v26  ;;  %474 = vst [vmem:[#allocation2 + $0x178] sm:$0xff] %v424_v28 }
 0x117   :  { %461 = vst [vmem:[#allocation2 + $0x110] sm:$0xff] %v256_v31  ;;  %471 = vst [vmem:[#allocation2 + $0x160] sm:$0xff] %v419_v32 }
 0x118   :  { %642 = shalt.err (!%p639_p4)
}
 0x119   :  { %s643_s15 = scalar_lea.hbm %s923_s3, 6144 }
 0x11a   :  { %p644_p5 = scmp.ne.s32.totalorder %s923_s3, %s643_s15  ;;  %p647_p6 = scmp.lt.u32.totalorder %s643_s15, %s923_s3 }
 0x11c   :  { %p649_p7 = pnand %p647_p6, %p644_p5 }
 0x11e   :  { %652 = shalt.err (!%p649_p7)
}
 0x11f   :  { %s657_s19 = smov 384   ;;  %s658_s20 = smov 24  }
 0x120   :  { %486 = dma.vmem_to_hbm [thread:$0]  %s481_s11, 6144, %s923_s3, [#allocation3], %s657_s19, %s657_s19, %s658_s20  }
 0x121   :  { %653 = dma.done.wait [#allocation3], 6144  }
 0x122   :  { %654 = vsyncadd [#allocation3], 4294961152 }
 0x123   :  { %490 = vsyncpa [#allocation3], 1 }

</bundles_post_ra>
